<compile_context>
chip_gen: v7x
topology: tpu7x:2x2x1
jax: 0.10.0
libtpu: 0.0.40
codegen_flags: <defaults>
</compile_context>

<pallas_src>
import jax
import jax.numpy as jnp
from jax.experimental import pallas as pl
from jax.experimental.pallas import tpu as pltpu


def _copy_kernel(src_ref, dst_ref):
    # Whole-array VMEM copy (single block, no grid).
    dst_ref[...] = src_ref[...]


def _mem_update_impl(flat2d):
    return pl.pallas_call(
        _copy_kernel,
        out_shape=jax.ShapeDtypeStruct(flat2d.shape, flat2d.dtype),
        in_specs=[pl.BlockSpec(memory_space=pltpu.MemorySpace.VMEM)],
        out_specs=pl.BlockSpec(memory_space=pltpu.MemorySpace.VMEM),
        # Output aliases the (donated) input: no extra HBM output buffer.
        input_output_aliases={0: 0},
    )(flat2d)


# Donate the (freshly reshaped, otherwise unused) input so the alias is real.
_mem_update = jax.jit(_mem_update_impl, donate_argnums=(0,))


def _flatten_lane_dense(x, confound_nc, in_channels, feat_size):
    """Flatten to a lane-dense 2-D layout for the copy kernel."""
    total = confound_nc * in_channels * feat_size * feat_size
    if total % 128 == 0:
        # e.g. default shapes: 3*512*49 = 75264 = 588*128 -> (588, 128)
        return jnp.reshape(x, (total // 128, 128))
    # Fallback: collapse spatial dims; full-array block keeps layout legal.
    return jnp.reshape(x, (confound_nc * in_channels, feat_size * feat_size))


class ConfounderNet:
    """JAX/Pallas port of ConfounderNet (stateful memory buffer)."""

    def __init__(self, in_channels=512, feat_size=7, confound_nc=3,
                 dtype=jnp.float32):
        self.confound_nc = confound_nc
        self.in_channels = in_channels
        self.feat_size = feat_size
        # register_buffer('mem_tensors', zeros(...)) -> deterministic zeros.
        self.mem_tensors = jnp.zeros(
            (confound_nc, in_channels, feat_size, feat_size), dtype=dtype
        )

    def forward(self, center_weights=None, is_test=False):
        # NOTE: like the PyTorch module, the buffer is rebound to the new
        # tensor, so its dtype follows center_weights (matches `.view()`
        # assignment semantics).
        # TODO(synk): mem_tensors is Python-side state; it is not a traced,
        # persistent buffer under jax.jit/scan.
        if (not is_test) and (center_weights is not None):
            flat = _flatten_lane_dense(
                center_weights, self.confound_nc, self.in_channels,
                self.feat_size,
            )
            updated = _mem_update(flat)
            self.mem_tensors = jnp.reshape(
                updated,
                (self.confound_nc, self.in_channels,
                 self.feat_size, self.feat_size),
            )
        return self.mem_tensors

    __call__ = forward


if __name__ == "__main__":
    key = jax.random.PRNGKey(0)

    # --- Case 1: lane-dense path (total divisible by 128) ------------------
    confound_nc, in_channels, feat_size = 3, 16, 8   # total = 3072 = 24*128
    net = ConfounderNet(in_channels=in_channels, feat_size=feat_size,
                        confound_nc=confound_nc)
    center_weights = jax.random.normal(
        key, (confound_nc * in_channels * feat_size * feat_size,),
        dtype=jnp.float32,
    )
    out_train = jax.block_until_ready(net(center_weights, is_test=False))
    ref = jnp.reshape(center_weights,
                      (confound_nc, in_channels, feat_size, feat_size))
    assert out_train.shape == ref.shape
    assert jnp.allclose(out_train, ref)

    # Test-mode call: returns stored buffer unchanged (no kernel launch).
    out_test = jax.block_until_ready(net(None, is_test=True))
    assert jnp.allclose(out_test, ref)

    # --- Case 2: fallback path (feat_size=7 like the PyTorch default) ------
    confound_nc2, in_channels2, feat_size2 = 3, 8, 7  # total = 1176 (not %128)
    net2 = ConfounderNet(in_channels=in_channels2, feat_size=feat_size2,
                         confound_nc=confound_nc2)
    key2 = jax.random.PRNGKey(0)
    cw2 = jax.random.normal(
        key2, (confound_nc2 * in_channels2 * feat_size2 * feat_size2,),
        dtype=jnp.float32,
    )
    out2 = jax.block_until_ready(net2(cw2, is_test=False))
    ref2 = jnp.reshape(cw2, (confound_nc2, in_channels2, feat_size2, feat_size2))
    assert jnp.allclose(out2, ref2)

    print("KERNEL_OK")
</pallas_src>

<mosaic_0001>
module attributes {stable_mosaic.version = 11 : i64} {
  func.func @_copy_kernel(%arg0: memref<24x128xf32, #tpu.memory_space<vmem>>, %arg1: memref<24x128xf32, #tpu.memory_space<vmem>>) attributes {dimension_semantics = [], scalar_prefetch = 0 : i64, scratch_operands = 0 : i64, tpu.core_type = #tpu.core_type<tc>} {
    %c0 = arith.constant 0 : index
    %c0_0 = arith.constant 0 : index
    %0 = vector.load %arg0[%c0, %c0_0] : memref<24x128xf32, #tpu.memory_space<vmem>>, vector<24x128xf32>
    %c0_1 = arith.constant 0 : index
    %c0_2 = arith.constant 0 : index
    %1 = vector.load %arg1[%c0_1, %c0_2] : memref<24x128xf32, #tpu.memory_space<vmem>>, vector<24x128xf32>
    tpu.vector_store %arg1[%c0_1, %c0_2], %0 {strides = array<i32>} : memref<24x128xf32, #tpu.memory_space<vmem>>, vector<24x128xf32>,
    return
  }
}

</mosaic_0001>

<bundles_post_ra>
// kernel: _mem_update_impl.1
= control target key start
LH: loop header
LB: loop body
LE: loop exit
PB: predicated region body
PF: predicated region fallthrough
CT: control target
= control target key end

     0   :  { %6 = vsyncpa [#allocation3], 0  ;;  %s136_s0 = inlined_call_operand.hbm [shape: f32[24,128], index: 0, kind: input, shape index: {}, may-alias: {0,1}]   ;;  %s137_s1 = inlined_call_operand.hbm [shape: f32[24,128], index: 1, kind: output, shape index: {}, may-alias: {0,1}]  }
   0x1   :  { %7 = vsyncpa [#allocation4], 0  ;;  %s98_s6 = smov [#allocation2]   ;;  %s50_s10 = scalar_lea.hbm %s136_s0, 384 }
   0x2   :  { %s13_s7 = sshll.u32 %s98_s6, 4  ;;  %p51_p0 = scmp.ne.s32.totalorder %s136_s0, %s50_s10  ;;  %s14_s7 = int_to_ptr.vmem [resolvable:$true] %s13_s7 }
   0x3   :  { %p54_p1 = scmp.lt.u32.totalorder %s50_s10, %s136_s0 }
   0x5   :  { %p56_p2 = pnand %p54_p1, %p51_p0 }
   0x7   :  { %59 = shalt.err (!%p56_p2)
}
   0x8   :  { %s60_s15 = scalar_lea.vmem %s14_s7, 384  ;;  %p65_p4 = scmp.lt.s32.totalorder %s14_s7, %s14_s7 }
   0x9   :  { %p61_p3 = scmp.ne.s32.totalorder %s14_s7, %s60_s15  ;;  %p66_p5 = scmp.lt.s32.totalorder %s60_s15, %s60_s15 }
   0xb   :  { %p67_p6 = por %p66_p5, %p65_p4 }
   0xd   :  { %p68_p7 = pnand %p67_p6, %p61_p3 }
   0xf   :  { %71 = shalt.err (!%p68_p7)
}
  0x10   :  { %s99_s16 = smov 128   ;;  %s100_s17 = smov 8  }
  0x11   :  { %19 = dma.hbm_to_vmem [thread:$0]  %s136_s0, 384, %s14_s7, [#allocation3], %s99_s16, %s99_s16, %s100_s17  }
  0x12   :  { %94 = dma.done.wait [#allocation3], 384  }
  0x13   :  { %95 = vsyncadd [#allocation3], 4294966912  ;;  %s101_s20 = smov [#allocation5]   ;;  %v23_v0 = vld [vmem:[#allocation2] sm:$0xff]  ;;  %v24_v1 = vld [vmem:[#allocation2 + $0x8] sm:$0xff] }
  0x14   :  { %s34_s21 = sshll.u32 %s101_s20, 4  ;;  %v25_v2 = vld [vmem:[#allocation2 + $0x10] sm:$0xff]  ;;  %26 = vst [vmem:[#allocation5] sm:$0xff] %v23_v0  ;;  %27 = vst [vmem:[#allocation5 + $0x8] sm:$0xff] %v24_v1  ;;  %s35_s21 = int_to_ptr.vmem [resolvable:$true] %s34_s21 }
  0x15   :  { %28 = vst [vmem:[#allocation5 + $0x10] sm:$0xff] %v25_v2  ;;  %s72_s22 = scalar_lea.vmem %s35_s21, 384  ;;  %p77_p9 = scmp.lt.s32.totalorder %s35_s21, %s35_s21 }
  0x16   :  { %p73_p8 = scmp.ne.s32.totalorder %s35_s21, %s72_s22  ;;  %p78_p10 = scmp.lt.s32.totalorder %s72_s22, %s72_s22 }
  0x18   :  { %p79_p11 = por %p78_p10, %p77_p9 }
  0x1a   :  { %p80_p12 = pnand %p79_p11, %p73_p8 }
  0x1c   :  { %83 = shalt.err (!%p80_p12)
}
  0x1d   :  { %s84_s24 = scalar_lea.hbm %s137_s1, 384 }
  0x1e   :  { %p85_p13 = scmp.ne.s32.totalorder %s137_s1, %s84_s24  ;;  %p88_p0 = scmp.lt.u32.totalorder %s84_s24, %s137_s1 }
  0x20   :  { %p90_p1 = pnand %p88_p0, %p85_p13 }
  0x22   :  { %93 = shalt.err (!%p90_p1)
}
  0x23   :  { %40 = dma.vmem_to_hbm [thread:$0]  %s35_s21, 384, %s137_s1, [#allocation4], %s99_s16, %s99_s16, %s100_s17  }
  0x24   :  { %96 = dma.done.wait [#allocation4], 384  }
  0x25   :  { %97 = vsyncadd [#allocation4], 4294966912 }
  0x26   :  { %44 = vsyncpa [#allocation3], 1 }
  0x27   :  { %45 = vsyncpa [#allocation4], 1 }

</bundles_post_ra>
